<compile_context>
chip_gen: v7x
topology: tpu7x:2x2x1
jax: 0.10.0
libtpu: 0.0.40
codegen_flags: <defaults>
</compile_context>

<pallas_src>
import functools

import jax
import jax.numpy as jnp
import numpy as np
from jax.experimental import pallas as pl
from jax.experimental.pallas import tpu as pltpu


def _round_up(x, m):
    return (x + m - 1) // m * m


def _temporal_block_kernel(pos_ref, x_ref, w1_ref, b1_ref, w2_ref, b2_ref,
                           *rest, K, dil, pad, L, has_downsample):
    # pos_ref: (1, N) int32     -- per-sample lane position (N = b_tile * L_p)
    # x_ref:   (C_in_p, N)      -- MXU dtype (bf16 or f32)
    # w1_ref:  (C_out_p, K*C_in_p), b1_ref: (C_out_p, 1) f32
    # w2_ref:  (C_out_p, K*C_out_p), b2_ref: (C_out_p, 1) f32
    # [wd_ref: (C_out_p, C_in_p), bd_ref: (C_out_p, 1)]  (only if downsample)
    # o_ref:   (C_out_p, N)
    if has_downsample:
        wd_ref, bd_ref, o_ref = rest
    else:
        (o_ref,) = rest

    mxu_dtype = x_ref.dtype
    x_raw = x_ref[...]                       # (C_in_p, N), MXU dtype
    x = x_raw.astype(jnp.float32)            # elementwise math in f32
    w1 = w1_ref[...]
    b1 = b1_ref[...].astype(jnp.float32)
    w2 = w2_ref[...]
    b2 = b2_ref[...].astype(jnp.float32)

    N = x.shape[1]
    pos = pos_ref[...]                       # (1, N) within-sample position
    shifts = [k * dil - pad for k in range(K)]
    # Hoisted per-tap boundary masks: a tap with static shift s reads source
    # position p + s of the SAME sample; it must lie in [0, L) (Conv1d zero
    # padding), which also stops rolled taps leaking across sample boundaries.
    valids = {s: (pos >= -s) & (pos < L - s) for s in shifts if s != 0}

    def dilated_conv(v, w_flat, bias):
        # v: (C, N) f32.  Stack the K shifted copies along the sublane axis
        # and contract all taps+channels in one MXU matmul over N lanes.
        pieces = []
        for s in shifts:
            if s == 0:
                pieces.append(v)
            else:
                u = pltpu.roll(v, shift=(-s) % N, axis=1)   # u[:, t] = v[:, (t+s) % N]
                pieces.append(jnp.where(valids[s], u, 0.0))
        slab = jnp.concatenate(pieces, axis=0) if K > 1 else pieces[0]
        y = jnp.dot(w_flat, slab.astype(mxu_dtype),
                    preferred_element_type=jnp.float32)
        return y + bias                                      # f32 bias add

    out1 = jnp.maximum(dilated_conv(x, w1, b1), 0.0)         # conv1 + ReLU
    # TODO(synk): nn.Dropout is identity in eval mode; training-mode (random
    # mask) dropout is not implemented here.
    out2 = jnp.maximum(dilated_conv(out1, w2, b2), 0.0)      # conv2 + ReLU
    if has_downsample:
        wd = wd_ref[...]
        bd = bd_ref[...].astype(jnp.float32)
        res = jnp.dot(wd, x_raw, preferred_element_type=jnp.float32) + bd
    else:
        res = x
    o_ref[...] = jnp.maximum(out2 + res, 0.0).astype(o_ref.dtype)


def temporal_block_forward(x, w1, b1, w2, b2, wd, bd, *,
                           kernel_size, stride, dilation, padding,
                           b_tile=None, mxu_dtype=jnp.bfloat16,
                           vmem_budget_bytes=None):
    """x: (B, C_in, L).  Weights already weight-norm-resolved (f32)."""
    assert stride == 1, "TemporalBlock residual add requires stride == 1"
    B, C_in, L = x.shape
    C_out = w1.shape[0]
    K = kernel_size
    assert L + 2 * padding - dilation * (K - 1) == L, \
        "residual add requires conv output length == input length"
    has_downsample = wd is not None
    if not has_downsample:
        assert C_in == C_out

    mxu_dtype = jnp.dtype(mxu_dtype)
    out_dtype = x.dtype
    # bf16 packs two rows per sublane -> pad channels to 16 for tile-dense
    # packing; f32 -> 8.
    sub = 16 if mxu_dtype.itemsize == 2 else 8
    C_in_p = _round_up(C_in, sub)
    C_out_p = _round_up(C_out, sub)
    # Lane-dense loads/stores (unmasked vst): pad L to a multiple of 128.
    L_p = _round_up(L, 128)
    # TODO(synk): for very long sequences, add an L grid axis with a halo of
    # 2*padding (receptive field of the two stacked convs) instead of keeping
    # the whole padded L resident per block.

    mxu_b = mxu_dtype.itemsize
    out_b = jnp.dtype(out_dtype).itemsize

    def vmem_est(bt):
        n = bt * L_p
        io = 2 * C_in_p * n * mxu_b + 2 * C_out_p * n * out_b + 2 * n * 4
        wgt = (C_out_p * K * C_in_p + C_out_p * K * C_out_p
               + C_out_p * C_in_p + 3 * C_out_p) * mxu_b
        live = (K * C_in_p + K * C_out_p + 3 * C_out_p) * n * 4
        return io + 2 * wgt + live      # 2*wgt: safe if Buffered(1) falls back

    if b_tile is None:
        # Conservative cross-generation budget (v7x has only 64 MiB physical).
        budget = int(vmem_budget_bytes) if vmem_budget_bytes else (24 << 20)
        # Keep >= 2 grid steps when possible so the "parallel" batch axis can
        # load-balance across two TensorCores (v7x) / megacore.
        max_bt = max(1, B // 2)
        b_tile = 1
        while b_tile * 2 <= max_bt and vmem_est(b_tile * 2) <= budget:
            b_tile *= 2
    B_pad = _round_up(B, b_tile)
    n_lanes = b_tile * L_p
    vmem_limit = int(min(max(2 * vmem_est(b_tile), 32 << 20), 48 << 20))

    # ---- layout plumbing: fold batch into the lane axis ----
    x_p = jnp.pad(x.astype(mxu_dtype),
                  ((0, B_pad - B), (0, C_in_p - C_in), (0, L_p - L)))
    x2d = jnp.transpose(x_p, (1, 0, 2)).reshape(C_in_p, B_pad * L_p)
    # Per-sample lane position, precomputed so the kernel needs no modulo.
    pos = jnp.broadcast_to(jnp.arange(L_p, dtype=jnp.int32)[None, :],
                           (B_pad, L_p)).reshape(1, B_pad * L_p)

    # Fold the K taps into the contraction dim: W_flat[o, k*C + c] = w[o, c, k].
    w1_p = jnp.pad(w1, ((0, C_out_p - C_out), (0, C_in_p - C_in), (0, 0)))
    w1_flat = jnp.transpose(w1_p, (0, 2, 1)).reshape(
        C_out_p, K * C_in_p).astype(mxu_dtype)
    b1_p = jnp.pad(b1, (0, C_out_p - C_out)).reshape(C_out_p, 1).astype(jnp.float32)
    w2_p = jnp.pad(w2, ((0, C_out_p - C_out), (0, C_out_p - C_out), (0, 0)))
    w2_flat = jnp.transpose(w2_p, (0, 2, 1)).reshape(
        C_out_p, K * C_out_p).astype(mxu_dtype)
    b2_p = jnp.pad(b2, (0, C_out_p - C_out)).reshape(C_out_p, 1).astype(jnp.float32)

    inputs = [pos, x2d, w1_flat, b1_p, w2_flat, b2_p]
    weight_shapes = [(C_out_p, K * C_in_p), (C_out_p, 1),
                     (C_out_p, K * C_out_p), (C_out_p, 1)]
    if has_downsample:
        wd_p = jnp.pad(wd.reshape(C_out, C_in),
                       ((0, C_out_p - C_out), (0, C_in_p - C_in))).astype(mxu_dtype)
        bd_p = jnp.pad(bd, (0, C_out_p - C_out)).reshape(C_out_p, 1).astype(jnp.float32)
        inputs += [wd_p, bd_p]
        weight_shapes += [(C_out_p, C_in_p), (C_out_p, 1)]

    kernel = functools.partial(
        _temporal_block_kernel, K=K, dil=dilation, pad=padding, L=L,
        has_downsample=has_downsample)

    def call(single_buffer_weights):
        def const_spec(shape):
            # Constant (grid-invariant) blocks: single-buffer to save VMEM.
            if single_buffer_weights:
                return pl.BlockSpec(shape, lambda i: (0, 0),
                                    pipeline_mode=pl.Buffered(1))
            return pl.BlockSpec(shape, lambda i: (0, 0))

        in_specs = [pl.BlockSpec((1, n_lanes), lambda i: (0, i)),       # pos
                    pl.BlockSpec((C_in_p, n_lanes), lambda i: (0, i))]  # x
        in_specs += [const_spec(s) for s in weight_shapes]
        grid_spec = pltpu.PrefetchScalarGridSpec(
            num_scalar_prefetch=0,
            grid=(B_pad // b_tile,),
            in_specs=in_specs,
            out_specs=pl.BlockSpec((C_out_p, n_lanes), lambda i: (0, i)))
        return pl.pallas_call(
            kernel,
            out_shape=jax.ShapeDtypeStruct((C_out_p, B_pad * L_p), out_dtype),
            grid_spec=grid_spec,
            compiler_params=pltpu.CompilerParams(
                dimension_semantics=("parallel",),
                vmem_limit_bytes=vmem_limit),
        )(*inputs)

    try:
        out2d = call(True)
    except Exception:
        # Fallback: default double-buffered weight blocks.
        out2d = call(False)

    out = out2d.reshape(C_out_p, B_pad, L_p)
    out = jnp.transpose(out, (1, 0, 2))
    return out[:B, :C_out, :L]


# ---------------- parameter setup (deterministic, synthetic) -----------------

def _weight_norm_apply(v, g):
    # PyTorch weight_norm: w = g * v / ||v||, norm over all dims except dim 0.
    norm = jnp.sqrt(jnp.sum(v * v, axis=(1, 2), keepdims=True))
    return g[:, None, None] * v / norm


def init_params(key, C_in, C_out, K):
    ks = jax.random.split(key, 8)

    def uni(k, shape, fan_in):
        bound = 1.0 / np.sqrt(fan_in)
        return jax.random.uniform(k, shape, jnp.float32, -bound, bound)

    v1 = uni(ks[0], (C_out, C_in, K), C_in * K)
    g1 = 1.0 + 0.1 * jax.random.normal(ks[1], (C_out,), jnp.float32)
    b1 = uni(ks[2], (C_out,), C_in * K)
    v2 = uni(ks[3], (C_out, C_out, K), C_out * K)
    g2 = 1.0 + 0.1 * jax.random.normal(ks[4], (C_out,), jnp.float32)
    b2 = uni(ks[5], (C_out,), C_out * K)
    w1 = _weight_norm_apply(v1, g1)
    w2 = _weight_norm_apply(v2, g2)
    if C_in != C_out:
        wd = uni(ks[6], (C_out, C_in, 1), C_in)
        bd = uni(ks[7], (C_out,), C_in)
    else:
        wd, bd = None, None
    return w1, b1, w2, b2, wd, bd


# ---------------------------- pure-JAX reference -----------------------------

def reference(x, w1, b1, w2, b2, wd, bd, pad, dil):
    def conv1d(x, w, b, p, d):
        y = jax.lax.conv_general_dilated(
            x, w, window_strides=(1,), padding=[(p, p)],
            rhs_dilation=(d,), dimension_numbers=("NCH", "OIH", "NCH"))
        return y + b[None, :, None]
    out = jax.nn.relu(conv1d(x, w1, b1, pad, dil))
    out = jax.nn.relu(conv1d(out, w2, b2, pad, dil))
    res = x if wd is None else conv1d(x, wd, bd, 0, 1)
    return jax.nn.relu(out + res)


if __name__ == "__main__":
    B, L = 2, 80                         # L=80 exercises the L->128 padding path
    K, stride, dilation, padding = 3, 1, 2, 2   # 2*padding == dilation*(K-1)

    key = jax.random.PRNGKey(0)
    kx, kp1, kp2 = jax.random.split(key, 3)

    # Config 1: C_in != C_out -> 1x1 downsample on the residual path.
    C_in, C_out = 4, 8
    x = jax.random.normal(kx, (B, C_in, L), jnp.float32)
    params = init_params(kp1, C_in, C_out, K)
    ref = reference(x, *params, padding, dilation)

    out_f32 = temporal_block_forward(
        x, *params, kernel_size=K, stride=stride, dilation=dilation,
        padding=padding, mxu_dtype=jnp.float32)
    out_f32 = jax.block_until_ready(out_f32)
    np.testing.assert_allclose(np.asarray(out_f32), np.asarray(ref),
                               rtol=1e-5, atol=1e-5)

    out_bf16 = temporal_block_forward(
        x, *params, kernel_size=K, stride=stride, dilation=dilation,
        padding=padding, mxu_dtype=jnp.bfloat16)
    out_bf16 = jax.block_until_ready(out_bf16)
    np.testing.assert_allclose(np.asarray(out_bf16), np.asarray(ref),
                               rtol=3e-2, atol=3e-2)

    # Config 2: identity residual (C_in == C_out, no downsample).
    C_in2 = C_out2 = 8
    x2 = jax.random.normal(kx, (B, C_in2, L), jnp.float32)
    params2 = init_params(kp2, C_in2, C_out2, K)
    ref2 = reference(x2, *params2, padding, dilation)
    out2 = temporal_block_forward(
        x2, *params2, kernel_size=K, stride=stride, dilation=dilation,
        padding=padding, mxu_dtype=jnp.float32)
    out2 = jax.block_until_ready(out2)
    np.testing.assert_allclose(np.asarray(out2), np.asarray(ref2),
                               rtol=1e-5, atol=1e-5)

    print("KERNEL_OK")
</pallas_src>

<mosaic_0001>
module attributes {stable_mosaic.version = 11 : i64} {
  func.func @_temporal_block_kernel(%arg0: i32, %arg1: memref<1x128xi32, #tpu.memory_space<vmem>>, %arg2: memref<8x128xf32, #tpu.memory_space<vmem>>, %arg3: memref<8x24xf32, #tpu.memory_space<vmem>>, %arg4: memref<8x1xf32, #tpu.memory_space<vmem>>, %arg5: memref<8x24xf32, #tpu.memory_space<vmem>>, %arg6: memref<8x1xf32, #tpu.memory_space<vmem>>, %arg7: memref<8x8xf32, #tpu.memory_space<vmem>>, %arg8: memref<8x1xf32, #tpu.memory_space<vmem>>, %arg9: memref<8x128xf32, #tpu.memory_space<vmem>>) attributes {dimension_semantics = [#tpu.dimension_semantics<parallel>], iteration_bounds = array<i64: 2>, scalar_prefetch = 0 : i64, scratch_operands = 0 : i64, tpu.core_type = #tpu.core_type<tc>, window_params = [{transform_indices = @transform_0, window_bounds = array<i64: 1, 128>}, {transform_indices = @transform_1, window_bounds = array<i64: 8, 128>}, {pipeline_mode = #tpu.pipeline_mode<synchronous>, transform_indices = @transform_2, window_bounds = array<i64: 8, 24>}, {pipeline_mode = #tpu.pipeline_mode<synchronous>, transform_indices = @transform_3, window_bounds = array<i64: 8, 1>}, {pipeline_mode = #tpu.pipeline_mode<synchronous>, transform_indices = @transform_4, window_bounds = array<i64: 8, 24>}, {pipeline_mode = #tpu.pipeline_mode<synchronous>, transform_indices = @transform_5, window_bounds = array<i64: 8, 1>}, {pipeline_mode = #tpu.pipeline_mode<synchronous>, transform_indices = @transform_6, window_bounds = array<i64: 8, 8>}, {pipeline_mode = #tpu.pipeline_mode<synchronous>, transform_indices = @transform_7, window_bounds = array<i64: 8, 1>}, {transform_indices = @transform_8, window_bounds = array<i64: 8, 128>}]} {
    %c0 = arith.constant 0 : index
    %c0_0 = arith.constant 0 : index
    %0 = vector.load %arg2[%c0, %c0_0] : memref<8x128xf32, #tpu.memory_space<vmem>>, vector<8x128xf32>
    %c0_1 = arith.constant 0 : index
    %c0_2 = arith.constant 0 : index
    %1 = vector.load %arg3[%c0_1, %c0_2] : memref<8x24xf32, #tpu.memory_space<vmem>>, vector<8x24xf32>
    %c0_3 = arith.constant 0 : index
    %c0_4 = arith.constant 0 : index
    %2 = vector.load %arg4[%c0_3, %c0_4] : memref<8x1xf32, #tpu.memory_space<vmem>>, vector<8x1xf32>
    %c0_5 = arith.constant 0 : index
    %c0_6 = arith.constant 0 : index
    %3 = vector.load %arg5[%c0_5, %c0_6] : memref<8x24xf32, #tpu.memory_space<vmem>>, vector<8x24xf32>
    %c0_7 = arith.constant 0 : index
    %c0_8 = arith.constant 0 : index
    %4 = vector.load %arg6[%c0_7, %c0_8] : memref<8x1xf32, #tpu.memory_space<vmem>>, vector<8x1xf32>
    %c0_9 = arith.constant 0 : index
    %c0_10 = arith.constant 0 : index
    %5 = vector.load %arg1[%c0_9, %c0_10] : memref<1x128xi32, #tpu.memory_space<vmem>>, vector<1x128xi32>
    %c2_i32 = arith.constant 2 : i32
    %6 = vector.broadcast %c2_i32 : i32 to vector<1x128xi32>
    %7 = arith.cmpi sge, %5, %6 : vector<1x128xi32>
    %c82_i32 = arith.constant 82 : i32
    %8 = vector.broadcast %c82_i32 : i32 to vector<1x128xi32>
    %9 = arith.cmpi slt, %5, %8 : vector<1x128xi32>
    %10 = arith.andi %7, %9 : vector<1x128xi1>
    %c-2_i32 = arith.constant -2 : i32
    %11 = vector.broadcast %c-2_i32 : i32 to vector<1x128xi32>
    %12 = arith.cmpi sge, %5, %11 : vector<1x128xi32>
    %c78_i32 = arith.constant 78 : i32
    %13 = vector.broadcast %c78_i32 : i32 to vector<1x128xi32>
    %14 = arith.cmpi slt, %5, %13 : vector<1x128xi32>
    %15 = arith.andi %12, %14 : vector<1x128xi1>
    %c2_i32_11 = arith.constant 2 : i32
    %16 = tpu.dynamic_rotate %0 by %c2_i32_11 dim 1 : vector<8x128xf32>, i32 -> vector<8x128xf32>
    %cst = arith.constant 0.000000e+00 : f32
    %17 = vector.shape_cast %10 : vector<1x128xi1> to vector<1x128xi1>
    %18 = vector.broadcast %17 : vector<1x128xi1> to vector<8x128xi1>
    %19 = vector.broadcast %cst : f32 to vector<8x128xf32>
    %20 = arith.select %18, %16, %19 : vector<8x128xi1>, vector<8x128xf32>
    %c126_i32 = arith.constant 126 : i32
    %21 = tpu.dynamic_rotate %0 by %c126_i32 dim 1 : vector<8x128xf32>, i32 -> vector<8x128xf32>
    %cst_12 = arith.constant 0.000000e+00 : f32
    %22 = vector.shape_cast %15 : vector<1x128xi1> to vector<1x128xi1>
    %23 = vector.broadcast %22 : vector<1x128xi1> to vector<8x128xi1>
    %24 = vector.broadcast %cst_12 : f32 to vector<8x128xf32>
    %25 = arith.select %23, %21, %24 : vector<8x128xi1>, vector<8x128xf32>
    %26 = tpu.concatenate %20, %0, %25 in 0 : vector<8x128xf32>, vector<8x128xf32>, vector<8x128xf32> -> vector<24x128xf32>
    %cst_13 = arith.constant dense<0.000000e+00> : vector<8x128xf32>
    %27 = tpu.matmul %1, %26, %cst_13 {dimension_numbers = #tpu.dot_dimension_numbers<[1], [0], [0], [1], [0, 0, 1, 1], [], []>} : vector<8x24xf32>, vector<24x128xf32>, vector<8x128xf32> -> vector<8x128xf32>
    %28 = vector.broadcast %2 : vector<8x1xf32> to vector<8x128xf32>
    %29 = arith.addf %27, %28 : vector<8x128xf32>
    %cst_14 = arith.constant 0.000000e+00 : f32
    %30 = vector.broadcast %cst_14 : f32 to vector<8x128xf32>
    %31 = arith.maximumf %29, %30 : vector<8x128xf32>
    %c2_i32_15 = arith.constant 2 : i32
    %32 = tpu.dynamic_rotate %31 by %c2_i32_15 dim 1 : vector<8x128xf32>, i32 -> vector<8x128xf32>
    %cst_16 = arith.constant 0.000000e+00 : f32
    %33 = vector.shape_cast %10 : vector<1x128xi1> to vector<1x128xi1>
    %34 = vector.broadcast %33 : vector<1x128xi1> to vector<8x128xi1>
    %35 = vector.broadcast %cst_16 : f32 to vector<8x128xf32>
    %36 = arith.select %34, %32, %35 : vector<8x128xi1>, vector<8x128xf32>
    %c126_i32_17 = arith.constant 126 : i32
    %37 = tpu.dynamic_rotate %31 by %c126_i32_17 dim 1 : vector<8x128xf32>, i32 -> vector<8x128xf32>
    %cst_18 = arith.constant 0.000000e+00 : f32
    %38 = vector.shape_cast %15 : vector<1x128xi1> to vector<1x128xi1>
    %39 = vector.broadcast %38 : vector<1x128xi1> to vector<8x128xi1>
    %40 = vector.broadcast %cst_18 : f32 to vector<8x128xf32>
    %41 = arith.select %39, %37, %40 : vector<8x128xi1>, vector<8x128xf32>
    %42 = tpu.concatenate %36, %31, %41 in 0 : vector<8x128xf32>, vector<8x128xf32>, vector<8x128xf32> -> vector<24x128xf32>
    %cst_19 = arith.constant dense<0.000000e+00> : vector<8x128xf32>
    %43 = tpu.matmul %3, %42, %cst_19 {dimension_numbers = #tpu.dot_dimension_numbers<[1], [0], [0], [1], [0, 0, 1, 1], [], []>} : vector<8x24xf32>, vector<24x128xf32>, vector<8x128xf32> -> vector<8x128xf32>
    %44 = vector.broadcast %4 : vector<8x1xf32> to vector<8x128xf32>
    %45 = arith.addf %43, %44 : vector<8x128xf32>
    %cst_20 = arith.constant 0.000000e+00 : f32
    %46 = vector.broadcast %cst_20 : f32 to vector<8x128xf32>
    %47 = arith.maximumf %45, %46 : vector<8x128xf32>
    %c0_21 = arith.constant 0 : index
    %c0_22 = arith.constant 0 : index
    %48 = vector.load %arg7[%c0_21, %c0_22] : memref<8x8xf32, #tpu.memory_space<vmem>>, vector<8x8xf32>
    %c0_23 = arith.constant 0 : index
    %c0_24 = arith.constant 0 : index
    %49 = vector.load %arg8[%c0_23, %c0_24] : memref<8x1xf32, #tpu.memory_space<vmem>>, vector<8x1xf32>
    %cst_25 = arith.constant dense<0.000000e+00> : vector<8x128xf32>
    %50 = tpu.matmul %48, %0, %cst_25 {dimension_numbers = #tpu.dot_dimension_numbers<[1], [0], [0], [1], [0, 0, 1, 1], [], []>} : vector<8x8xf32>, vector<8x128xf32>, vector<8x128xf32> -> vector<8x128xf32>
    %51 = vector.broadcast %49 : vector<8x1xf32> to vector<8x128xf32>
    %52 = arith.addf %50, %51 : vector<8x128xf32>
    %53 = arith.addf %47, %52 : vector<8x128xf32>
    %cst_26 = arith.constant 0.000000e+00 : f32
    %54 = vector.broadcast %cst_26 : f32 to vector<8x128xf32>
    %55 = arith.maximumf %53, %54 : vector<8x128xf32>
    %c0_27 = arith.constant 0 : index
    %c0_28 = arith.constant 0 : index
    %56 = vector.load %arg9[%c0_27, %c0_28] : memref<8x128xf32, #tpu.memory_space<vmem>>, vector<8x128xf32>
    tpu.vector_store %arg9[%c0_27, %c0_28], %55 {strides = array<i32>} : memref<8x128xf32, #tpu.memory_space<vmem>>, vector<8x128xf32>,
    return
  }
  func.func @transform_0(%arg0: i32) -> (i32, i32) {
    %c0_i32 = arith.constant 0 : i32
    %c0_i32_0 = arith.constant 0 : i32
    return %c0_i32, %arg0 : i32, i32
  }
  func.func @transform_1(%arg0: i32) -> (i32, i32) {
    %c0_i32 = arith.constant 0 : i32
    %c0_i32_0 = arith.constant 0 : i32
    return %c0_i32, %arg0 : i32, i32
  }
  func.func @transform_2(%arg0: i32) -> (i32, i32) {
    %c0_i32 = arith.constant 0 : i32
    %c0_i32_0 = arith.constant 0 : i32
    %c0_i32_1 = arith.constant 0 : i32
    return %c0_i32, %c0_i32_0 : i32, i32
  }
  func.func @transform_3(%arg0: i32) -> (i32, i32) {
    %c0_i32 = arith.constant 0 : i32
    %c0_i32_0 = arith.constant 0 : i32
    %c0_i32_1 = arith.constant 0 : i32
    return %c0_i32, %c0_i32_0 : i32, i32
  }
  func.func @transform_4(%arg0: i32) -> (i32, i32) {
    %c0_i32 = arith.constant 0 : i32
    %c0_i32_0 = arith.constant 0 : i32
    %c0_i32_1 = arith.constant 0 : i32
    return %c0_i32, %c0_i32_0 : i32, i32
  }
  func.func @transform_5(%arg0: i32) -> (i32, i32) {
    %c0_i32 = arith.constant 0 : i32
    %c0_i32_0 = arith.constant 0 : i32
    %c0_i32_1 = arith.constant 0 : i32
    return %c0_i32, %c0_i32_0 : i32, i32
  }
  func.func @transform_6(%arg0: i32) -> (i32, i32) {
    %c0_i32 = arith.constant 0 : i32
    %c0_i32_0 = arith.constant 0 : i32
    %c0_i32_1 = arith.constant 0 : i32
    return %c0_i32, %c0_i32_0 : i32, i32
  }
  func.func @transform_7(%arg0: i32) -> (i32, i32) {
    %c0_i32 = arith.constant 0 : i32
    %c0_i32_0 = arith.constant 0 : i32
    %c0_i32_1 = arith.constant 0 : i32
    return %c0_i32, %c0_i32_0 : i32, i32
  }
  func.func @transform_8(%arg0: i32) -> (i32, i32) {
    %c0_i32 = arith.constant 0 : i32
    %c0_i32_0 = arith.constant 0 : i32
    return %c0_i32, %arg0 : i32, i32
  }
}

module attributes {stable_mosaic.version = 11 : i64} {
  func.func @_temporal_block_kernel(%arg0: i32, %arg1: memref<1x128xi32, #tpu.memory_space<vmem>>, %arg2: memref<8x128xf32, #tpu.memory_space<vmem>>, %arg3: memref<8x24xf32, #tpu.memory_space<vmem>>, %arg4: memref<8x1xf32, #tpu.memory_space<vmem>>, %arg5: memref<8x24xf32, #tpu.memory_space<vmem>>, %arg6: memref<8x1xf32, #tpu.memory_space<vmem>>, %arg7: memref<8x8xf32, #tpu.memory_space<vmem>>, %arg8: memref<8x1xf32, #tpu.memory_space<vmem>>, %arg9: memref<8x128xf32, #tpu.memory_space<vmem>>) attributes {dimension_semantics = [#tpu.dimension_semantics<parallel>], iteration_bounds = array<i64: 2>, scalar_prefetch = 0 : i64, scratch_operands = 0 : i64, tpu.core_type = #tpu.core_type<tc>, window_params = [{transform_indices = @transform_0, window_bounds = array<i64: 1, 128>}, {transform_indices = @transform_1, window_bounds = array<i64: 8, 128>}, {pipeline_mode = #tpu.pipeline_mode<synchronous>, transform_indices = @transform_2, window_bounds = array<i64: 8, 24>}, {pipeline_mode = #tpu.pipeline_mode<synchronous>, transform_indices = @transform_3, window_bounds = array<i64: 8, 1>}, {pipeline_mode = #tpu.pipeline_mode<synchronous>, transform_indices = @transform_4, window_bounds = array<i64: 8, 24>}, {pipeline_mode = #tpu.pipeline_mode<synchronous>, transform_indices = @transform_5, window_bounds = array<i64: 8, 1>}, {pipeline_mode = #tpu.pipeline_mode<synchronous>, transform_indices = @transform_6, window_bounds = array<i64: 8, 8>}, {pipeline_mode = #tpu.pipeline_mode<synchronous>, transform_indices = @transform_7, window_bounds = array<i64: 8, 1>}, {transform_indices = @transform_8, window_bounds = array<i64: 8, 128>}]} {
    %c0 = arith.constant 0 : index
    %c0_0 = arith.constant 0 : index
    %0 = vector.load %arg2[%c0, %c0_0] : memref<8x128xf32, #tpu.memory_space<vmem>>, vector<8x128xf32>
    %c0_1 = arith.constant 0 : index
    %c0_2 = arith.constant 0 : index
    %1 = vector.load %arg3[%c0_1, %c0_2] : memref<8x24xf32, #tpu.memory_space<vmem>>, vector<8x24xf32>
    %c0_3 = arith.constant 0 : index
    %c0_4 = arith.constant 0 : index
    %2 = vector.load %arg4[%c0_3, %c0_4] : memref<8x1xf32, #tpu.memory_space<vmem>>, vector<8x1xf32>
    %c0_5 = arith.constant 0 : index
    %c0_6 = arith.constant 0 : index
    %3 = vector.load %arg5[%c0_5, %c0_6] : memref<8x24xf32, #tpu.memory_space<vmem>>, vector<8x24xf32>
    %c0_7 = arith.constant 0 : index
    %c0_8 = arith.constant 0 : index
    %4 = vector.load %arg6[%c0_7, %c0_8] : memref<8x1xf32, #tpu.memory_space<vmem>>, vector<8x1xf32>
    %c0_9 = arith.constant 0 : index
    %c0_10 = arith.constant 0 : index
    %5 = vector.load %arg1[%c0_9, %c0_10] : memref<1x128xi32, #tpu.memory_space<vmem>>, vector<1x128xi32>
    %c2_i32 = arith.constant 2 : i32
    %6 = vector.broadcast %c2_i32 : i32 to vector<1x128xi32>
    %7 = arith.cmpi sge, %5, %6 : vector<1x128xi32>
    %c82_i32 = arith.constant 82 : i32
    %8 = vector.broadcast %c82_i32 : i32 to vector<1x128xi32>
    %9 = arith.cmpi slt, %5, %8 : vector<1x128xi32>
    %10 = arith.andi %7, %9 : vector<1x128xi1>
    %c-2_i32 = arith.constant -2 : i32
    %11 = vector.broadcast %c-2_i32 : i32 to vector<1x128xi32>
    %12 = arith.cmpi sge, %5, %11 : vector<1x128xi32>
    %c78_i32 = arith.constant 78 : i32
    %13 = vector.broadcast %c78_i32 : i32 to vector<1x128xi32>
    %14 = arith.cmpi slt, %5, %13 : vector<1x128xi32>
    %15 = arith.andi %12, %14 : vector<1x128xi1>
    %c2_i32_11 = arith.constant 2 : i32
    %16 = tpu.dynamic_rotate %0 by %c2_i32_11 dim 1 : vector<8x128xf32>, i32 -> vector<8x128xf32>
    %cst = arith.constant 0.000000e+00 : f32
    %17 = vector.shape_cast %10 : vector<1x128xi1> to vector<1x128xi1>
    %18 = vector.broadcast %17 : vector<1x128xi1> to vector<8x128xi1>
    %19 = vector.broadcast %cst : f32 to vector<8x128xf32>
    %20 = arith.select %18, %16, %19 : vector<8x128xi1>, vector<8x128xf32>
    %c126_i32 = arith.constant 126 : i32
    %21 = tpu.dynamic_rotate %0 by %c126_i32 dim 1 : vector<8x128xf32>, i32 -> vector<8x128xf32>
    %cst_12 = arith.constant 0.000000e+00 : f32
    %22 = vector.shape_cast %15 : vector<1x128xi1> to vector<1x128xi1>
    %23 = vector.broadcast %22 : vector<1x128xi1> to vector<8x128xi1>
    %24 = vector.broadcast %cst_12 : f32 to vector<8x128xf32>
    %25 = arith.select %23, %21, %24 : vector<8x128xi1>, vector<8x128xf32>
    %26 = tpu.concatenate %20, %0, %25 in 0 : vector<8x128xf32>, vector<8x128xf32>, vector<8x128xf32> -> vector<24x128xf32>
    %cst_13 = arith.constant dense<0.000000e+00> : vector<8x128xf32>
    %27 = tpu.matmul %1, %26, %cst_13 {dimension_numbers = #tpu.dot_dimension_numbers<[1], [0], [0], [1], [0, 0, 1, 1], [], []>} : vector<8x24xf32>, vector<24x128xf32>, vector<8x128xf32> -> vector<8x128xf32>
    %28 = vector.broadcast %2 : vector<8x1xf32> to vector<8x128xf32>
    %29 = arith.addf %27, %28 : vector<8x128xf32>
    %cst_14 = arith.constant 0.000000e+00 : f32
    %30 = vector.broadcast %cst_14 : f32 to vector<8x128xf32>
    %31 = arith.maximumf %29, %30 : vector<8x128xf32>
    %c2_i32_15 = arith.constant 2 : i32
    %32 = tpu.dynamic_rotate %31 by %c2_i32_15 dim 1 : vector<8x128xf32>, i32 -> vector<8x128xf32>
    %cst_16 = arith.constant 0.000000e+00 : f32
    %33 = vector.shape_cast %10 : vector<1x128xi1> to vector<1x128xi1>
    %34 = vector.broadcast %33 : vector<1x128xi1> to vector<8x128xi1>
    %35 = vector.broadcast %cst_16 : f32 to vector<8x128xf32>
    %36 = arith.select %34, %32, %35 : vector<8x128xi1>, vector<8x128xf32>
    %c126_i32_17 = arith.constant 126 : i32
    %37 = tpu.dynamic_rotate %31 by %c126_i32_17 dim 1 : vector<8x128xf32>, i32 -> vector<8x128xf32>
    %cst_18 = arith.constant 0.000000e+00 : f32
    %38 = vector.shape_cast %15 : vector<1x128xi1> to vector<1x128xi1>
    %39 = vector.broadcast %38 : vector<1x128xi1> to vector<8x128xi1>
    %40 = vector.broadcast %cst_18 : f32 to vector<8x128xf32>
    %41 = arith.select %39, %37, %40 : vector<8x128xi1>, vector<8x128xf32>
    %42 = tpu.concatenate %36, %31, %41 in 0 : vector<8x128xf32>, vector<8x128xf32>, vector<8x128xf32> -> vector<24x128xf32>
    %cst_19 = arith.constant dense<0.000000e+00> : vector<8x128xf32>
    %43 = tpu.matmul %3, %42, %cst_19 {dimension_numbers = #tpu.dot_dimension_numbers<[1], [0], [0], [1], [0, 0, 1, 1], [], []>} : vector<8x24xf32>, vector<24x128xf32>, vector<8x128xf32> -> vector<8x128xf32>
    %44 = vector.broadcast %4 : vector<8x1xf32> to vector<8x128xf32>
    %45 = arith.addf %43, %44 : vector<8x128xf32>
    %cst_20 = arith.constant 0.000000e+00 : f32
    %46 = vector.broadcast %cst_20 : f32 to vector<8x128xf32>
    %47 = arith.maximumf %45, %46 : vector<8x128xf32>
    %c0_21 = arith.constant 0 : index
    %c0_22 = arith.constant 0 : index
    %48 = vector.load %arg7[%c0_21, %c0_22] : memref<8x8xf32, #tpu.memory_space<vmem>>, vector<8x8xf32>
    %c0_23 = arith.constant 0 : index
    %c0_24 = arith.constant 0 : index
    %49 = vector.load %arg8[%c0_23, %c0_24] : memref<8x1xf32, #tpu.memory_space<vmem>>, vector<8x1xf32>
    %cst_25 = arith.constant dense<0.000000e+00> : vector<8x128xf32>
    %50 = tpu.matmul %48, %0, %cst_25 {dimension_numbers = #tpu.dot_dimension_numbers<[1], [0], [0], [1], [0, 0, 1, 1], [], []>} : vector<8x8xf32>, vector<8x128xf32>, vector<8x128xf32> -> vector<8x128xf32>
    %51 = vector.broadcast %49 : vector<8x1xf32> to vector<8x128xf32>
    %52 = arith.addf %50, %51 : vector<8x128xf32>
    %53 = arith.addf %47, %52 : vector<8x128xf32>
    %cst_26 = arith.constant 0.000000e+00 : f32
    %54 = vector.broadcast %cst_26 : f32 to vector<8x128xf32>
    %55 = arith.maximumf %53, %54 : vector<8x128xf32>
    %c0_27 = arith.constant 0 : index
    %c0_28 = arith.constant 0 : index
    %56 = vector.load %arg9[%c0_27, %c0_28] : memref<8x128xf32, #tpu.memory_space<vmem>>, vector<8x128xf32>
    tpu.vector_store %arg9[%c0_27, %c0_28], %55 {strides = array<i32>} : memref<8x128xf32, #tpu.memory_space<vmem>>, vector<8x128xf32>,
    return
  }
  func.func @transform_0(%arg0: i32) -> (i32, i32) {
    %c0_i32 = arith.constant 0 : i32
    %c0_i32_0 = arith.constant 0 : i32
    return %c0_i32, %arg0 : i32, i32
  }
  func.func @transform_1(%arg0: i32) -> (i32, i32) {
    %c0_i32 = arith.constant 0 : i32
    %c0_i32_0 = arith.constant 0 : i32
    return %c0_i32, %arg0 : i32, i32
  }
  func.func @transform_2(%arg0: i32) -> (i32, i32) {
    %c0_i32 = arith.constant 0 : i32
    %c0_i32_0 = arith.constant 0 : i32
    %c0_i32_1 = arith.constant 0 : i32
    return %c0_i32, %c0_i32_0 : i32, i32
  }
  func.func @transform_3(%arg0: i32) -> (i32, i32) {
    %c0_i32 = arith.constant 0 : i32
    %c0_i32_0 = arith.constant 0 : i32
    %c0_i32_1 = arith.constant 0 : i32
    return %c0_i32, %c0_i32_0 : i32, i32
  }
  func.func @transform_4(%arg0: i32) -> (i32, i32) {
    %c0_i32 = arith.constant 0 : i32
    %c0_i32_0 = arith.constant 0 : i32
    %c0_i32_1 = arith.constant 0 : i32
    return %c0_i32, %c0_i32_0 : i32, i32
  }
  func.func @transform_5(%arg0: i32) -> (i32, i32) {
    %c0_i32 = arith.constant 0 : i32
    %c0_i32_0 = arith.constant 0 : i32
    %c0_i32_1 = arith.constant 0 : i32
    return %c0_i32, %c0_i32_0 : i32, i32
  }
  func.func @transform_6(%arg0: i32) -> (i32, i32) {
    %c0_i32 = arith.constant 0 : i32
    %c0_i32_0 = arith.constant 0 : i32
    %c0_i32_1 = arith.constant 0 : i32
    return %c0_i32, %c0_i32_0 : i32, i32
  }
  func.func @transform_7(%arg0: i32) -> (i32, i32) {
    %c0_i32 = arith.constant 0 : i32
    %c0_i32_0 = arith.constant 0 : i32
    %c0_i32_1 = arith.constant 0 : i32
    return %c0_i32, %c0_i32_0 : i32, i32
  }
  func.func @transform_8(%arg0: i32) -> (i32, i32) {
    %c0_i32 = arith.constant 0 : i32
    %c0_i32_0 = arith.constant 0 : i32
    return %c0_i32, %arg0 : i32, i32
  }
}

</mosaic_0001>

<bundles_post_ra>
// kernel: tpu_custom_call.1
= control target key start
LH: loop header
LB: loop body
LE: loop exit
PB: predicated region body
PF: predicated region fallthrough
CT: control target
= control target key end

     0   :  { %13 = vsyncpa [#allocation3], 0  ;;  %s1039_s0 = inlined_call_operand.vmem [shape: s32[1,256], index: 0, kind: input, shape index: {}]   ;;  %s1040_s1 = inlined_call_operand.vmem [shape: f32[8,256], index: 1, kind: input, shape index: {}]   ;;  %s1041_s2 = inlined_call_operand.vmem [shape: f32[8,24], index: 2, kind: input, shape index: {}]   ;;  %s1042_s3 = inlined_call_operand.vmem [shape: f32[8,1], index: 3, kind: input, shape index: {}]   ;;  %s1043_s4 = inlined_call_operand.vmem [shape: f32[8,24], index: 4, kind: input, shape index: {}]   ;;  %s1044_s5 = inlined_call_operand.vmem [shape: f32[8,1], index: 5, kind: input, shape index: {}]   ;;  %s1045_s6 = inlined_call_operand.vmem [shape: f32[8,8], index: 6, kind: input, shape index: {}]   ;;  %s1046_s7 = inlined_call_operand.vmem [shape: f32[8,1], index: 7, kind: input, shape index: {}]   ;;  %s1047_s8 = inlined_call_operand.hbm [shape: f32[8,256], index: 8, kind: output, shape index: {}]  }
   0x1   :  { %15 = vsyncpa [#allocation3 + $0x1], 0  ;;  %s899_s27 = smov 0   ;;  %s901_s28 = smov 0  }
   0x2   :  { %s903_s29 = smov 0   ;;  %s905_s30 = smov 0  }
   0x3 LB: > { %s920_s9 = sadd.s32 4294967295, %s844_s30   ;;  %s676_s10 = sadd.s32 4294967294, %s844_s30   ;;  %s844_s30 = sphi %s905_s30, %s1055_s30   ;;  %s840_s29 = sphi %s903_s29, %s1054_s29   ;;  %s836_s28 = sphi %s901_s28, %s1053_s28   ;;  %s832_s27 = sphi %s899_s27, %s1052_s27  }
   0x4   : > { %s924_s11 = sadd.s32 1, %s844_s30   ;;  %s206_s12 = sadd.s32 1, %s840_s29 }
   0x5   : > { %s203_s13 = ssub.s32 %s844_s30, %s924_s11  ;;  %p216_p0 = scmp.ne.s32.totalorder %s840_s29, %s836_s28 }
   0x6   : > { %p204_p1 = scmp.eq.s32.totalorder %s203_s13, 0  ;;  %p217_p2 = scmp.eq.s32.totalorder %s920_s9, 1 }
   0x7   : > { %p222_p3 = scmp.ne.s32.totalorder %s836_s28, %s832_s27  ;;  %p223_p4 = scmp.eq.s32.totalorder %s676_s10, 1 }
   0x8   : > { %s935_s14 = scalar_select %p204_p1, %s840_s29, %s206_s12  }
   0x9   : > { %p937_p5 = por %p217_p2, %p216_p0  ;;  %p941_p6 = por %p223_p4, %p222_p3 }
   0xa   : > { %p679_p7 = scmp.ge.s32.totalorder %s844_s30, 1  ;;  %p272_p8 = scmp.lt.s32.totalorder %s844_s30, 3 }
   0xc   : > { %p273_p9 = pnand %p679_p7, %p272_p8 }
   0xd   : > { %p308_p10 = scmp.lt.s32.totalorder (!%p273_p9), %s920_s9, 1  ;;  %v846_v0 = vmov (!%p273_p9), 0.0|0.0   ;;  %v847_v1 = vmov (!%p273_p9), 0   ;;  %v317_v2 = vld [vmem:[%s1042_s3] sm:$0xff] (!%p273_p9)  ;;  %vm848_vm0 = vmmov (!%p273_p9), 0   ;;  %v849_v3 = vmov (!%p273_p9), 0.0  }
   0xe   : > { %276 = sbr.rel (%p273_p9) target bundleno = 720 (0x2d0), region = 52  ;;  %726 = vmatprep.subr.bf16.mxu0 (!%p273_p9), %v846_v0  ;;  %780 = vset.pattern.permute.xlu1 (!%p273_p9), %v847_v1  ;;  %s850_s10 = smov (!%p273_p9), 2   ;;  %v330_v8 = vlaneseq (!%p273_p9)  ;;  %vm852_vm8 = vmmov (!%p273_p9), 1   ;;  %v316_v17 = vld [vmem:[%s1041_s2] sm:$0xff] (!%p273_p9)  ;;  %vm350_vm11 = vcmask (!%p273_p9), 195584   ;;  %vm517_vm12 = vcmask (!%p273_p9), 64512  }
   0xf   : > { %709 = vmatprep.mubr.msk.f32.mxu0 (!%p273_p9), %vm848_vm0, %v849_v3  ;;  %347 = vperm.xlu1 (!%p273_p9), %780, %v317_v2   ;;  %s851_s12 = smov (!%p273_p9), 126   ;;  %v510_v19 = vld [vmem:[%s1045_s6] sm:$0xff] (!%p273_p9) }
  0x10   : > { %730 = vmatprep.subr.bf16.mxu1 (!%p273_p9), %v846_v0  ;;  %718 = vmatprep.mubr.msk.f32.mxu1 (!%p273_p9), %vm848_vm0, %v849_v3  ;;  %v331_v9 = vshrl.u32 (!%p273_p9), %v330_v8, 7  ;;  %v319_v24 = vld [vmem:[%s1044_s5] sm:$0xff] (!%p273_p9) }
  0x11   : > { %781 = vset.pattern.permute.xlu0 (!%p273_p9), %v847_v1  ;;  %v511_v25 = vld [vmem:[%s1046_s7] sm:$0xff] (!%p273_p9) }
  0x12   : > { %v332_v10 = vsub.s32 (!%p273_p9), 0, %v331_v9  ;;  %v318_v28 = vld [vmem:[%s1043_s4] sm:$0xff] (!%p273_p9) }
  0x15   : > { %s309_s19 = scalar_select %p308_p10, %s920_s9, 1 }
  0x17   : > { %s681_s20 = sshll.u32 %s309_s19, 3  ;;  %s310_s23 = scalar_lea.vmem %s1039_s0, %s309_s19 }
  0x18   : > { %s314_s26 = scalar_lea.vmem %s1040_s1, %s681_s20  ;;  %v320_v4 = vld [vmem:[%s310_s23] sm:$0x1] }
  0x19   : > { %v315_v5 = vld [vmem:[%s314_s26] sm:$0xff]  ;;  %vm321_vm1 = vcmp.ge.s32.totalorder %v320_v4, 2  ;;  %vm322_vm2 = vcmp.lt.s32.totalorder %v320_v4, 82  ;;  %vm324_vm3 = vcmp.ge.s32.totalorder %v320_v4, 4294967294  ;;  %vm325_vm4 = vcmp.lt.s32.totalorder %v320_v4, 78  ;;  %s305_s26 = sand.u32 1, %s836_s28  }
  0x1a   : > { %327 = vrot.lane.b32.xlu0 %v315_v5, %s850_s10  ;;  %vm323_vm5 = vmand %vm321_vm1, %vm322_vm2  ;;  %s595_s21 = scalar_lea.sflag [#allocation3], %s305_s26 }
  0x1b   : > { %v329_v6 = vsel %vm323_vm5, 1, %v847_v1  ;;  %vm326_vm6 = vmand %vm324_vm3, %vm325_vm4 }
  0x1c   : > { %v338_v7 = vsel %vm326_vm6, 1, %v847_v1  ;;  %v333_v11 = vrot.slane %v329_v6, %v332_v10 }
  0x1d   : > { %v342_v14 = vrot.slane %v338_v7, %v332_v10 }
  0x1e   : > { %336 = vrot.lane.b32.xlu0 %v315_v5, %s851_s12  ;;  %vm334_vm7 = vcmp.eq.s32.totalorder %v333_v11, 1 }
  0x1f   : > { %vm962_vm9 = vmpackc.low %vm852_vm8, %vm334_vm7  ;;  %vm343_vm10 = vcmp.eq.s32.totalorder %v342_v14, 1 }
  0x8c   : > { %v328_v12 = vpop.permute.xlu0 %327 }
  0x8d   : > { %v727_v15 = vpack.c.bf16 %v315_v5, %v328_v12 }
  0x8e   : > { %v348_v18 = vpop.permute.xlu1 %347 }
  0x8f   : > { %729 = vmatpush3.bf16.msk.msra.mxu0 %vm962_vm9, %v727_v15 }
  0x90   : > { %v337_v16 = vpop.permute.xlu0 %336  ;;  %707 = vmatprep.subr.mxu0 %v849_v3 }
  0x93   : > { %708 = vmatpush3.msk.msra.mxu0 %vm343_vm10, %v337_v16 }
  0x94   : > { %710 = vmatmul.mubr.msk.f32.vlgmr.msra.gmra.mrb[0].mxu0 %vm350_vm11, %v316_v17  ;;  %721 = vmatprep.subr.mxu0 %v849_v3 }
  0x95   : > { %722 = vmatpush3.msra.mxu0 %v315_v5  ;;  %723 = vmatprep.mubr.msk.f32.mxu0 %vm848_vm0, %v849_v3 }
  0x98   : > { %724 = vmatmul.mubr.msk.f32.vlgmr.msra.gmra.mrb[2].mxu0 %vm517_vm12, %v510_v19 }
 0x167   : > { %v420_v20 = vpop.f32.mrb[0].mxu0 }
 0x168   : > { %v421_v21 = vadd.f32 %v420_v20, %v348_v18  ;;  %v711_v22 = vpop.f32.mrb[1].mxu0 }
 0x16a   : > { %v424_v23 = vmax.f32 %v421_v21, 0.0 }
 0x16b   : > { %v587_v30 = vpop.f32.mrb[2].mxu0 }
 0x16c   : > { %428 = vrot.lane.b32.xlu0 %v424_v23, %s851_s12  ;;  %425 = vrot.lane.b32.xlu1 %v424_v23, %s850_s10  ;;  %v725_v31 = vpop.f32.mrb[3].mxu0  ;;  %s680_s10 = sshll.u32 %s305_s26, 3  ;;  %s690_s12 = sshll.u32 %s920_s9, 7 }
 0x16d   : > { %s307_s13 = scalar_lea.vmem [#allocation2], %s680_s10  ;;  %s997_s20 = scalar_lea.hbm %s1047_s8, %s690_s12 }
 0x16e   : > { %s608_s17 = sshll.u32 %s307_s13, 4  ;;  %s853_s9 = smov [#allocation2]   ;;  %s999_s17 = int_to_ptr.vmem [resolvable:$true] %s608_s17 }
 0x16f   : > { %s782_s22 = scalar_lea.vmem %s999_s17, 128  ;;  %s786_s23 = sshll.u32 %s853_s9, 4  ;;  %s787_s23 = int_to_ptr.vmem [resolvable:$false] %s786_s23 }
 0x170   : > { %433 = vperm.xlu1 %780, %v319_v24   ;;  %514 = vperm.xlu0 %781, %v511_v25   ;;  %p783_p11 = scmp.ne.s32.totalorder %s999_s17, %s782_s22  ;;  %s788_s24 = scalar_lea.vmem %s787_s23, 256 }
 0x171   : > { %p789_p0 = scmp.lt.s32.totalorder %s999_s17, %s787_s23  ;;  %p790_p1 = scmp.lt.s32.totalorder %s788_s24, %s782_s22 }
 0x172   : > { %p784_p12 = pnand %p783_p11, %p937_p5 }
 0x173   : > { %p791_p2 = por %p790_p1, %p789_p0 }
 0x174   : > { %p785_p13 = pneg %p784_p12 }
 0x176   : > { %p792_p3 = pnand %p791_p2, %p785_p13 }
 0x1de   : > { %v426_v26 = vpop.permute.xlu1 %425  ;;  %v429_v29 = vpop.permute.xlu0 %428 }
 0x1df   : > { %v731_v27 = vpack.c.bf16 %v424_v23, %v426_v26 }
 0x1e1   : > { %733 = vmatpush3.bf16.msk.msra.mxu1 %vm962_vm9, %v731_v27 }
 0x1e2   : > { %716 = vmatprep.subr.mxu1 %v849_v3 }
 0x1e5   : > { %717 = vmatpush3.msk.msra.mxu1 %vm343_vm10, %v429_v29 }
 0x1e6   : > { %719 = vmatmul.mubr.msk.f32.vlgmr.msra.gmra.mrb[0].mxu1 %vm350_vm11, %v318_v28 }
 0x1ef   : > { %v515_v32 = vpop.permute.xlu0 %514  ;;  %v434_v33 = vpop.permute.xlu1 %433 }
 0x1f0   : > { %v588_v37 = vadd.f32 %v587_v30, %v515_v32 }
 0x2b9   : > { %v505_v34 = vpop.f32.mrb[0].mxu1 }
 0x2ba   : > { %v506_v35 = vadd.f32 %v505_v34, %v434_v33  ;;  %v720_v36 = vpop.f32.mrb[1].mxu1 }
 0x2bc   : > { %v509_v38 = vmax.f32 %v506_v35, 0.0 }
 0x2be   : > { %v591_v39 = vadd.f32 %v588_v37, %v509_v38 }
 0x2c0   : > { %v592_v40 = vmax.f32 %v591_v39, 0.0 }
 0x2c2   : > { %593 = vst [vmem:[%s307_s13] sm:$0xff] %v592_v40 }
 0x2c3   : > { %795 = shalt.err (!%p792_p3)
}
 0x2c4   : > { %s796_s25 = scalar_lea.hbm %s997_s20, 128  ;;  %s800_s12 = scalar_lea.hbm %s1047_s8, 256 }
 0x2c5   : > { %p797_p4 = scmp.ne.s32.totalorder %s997_s20, %s796_s25  ;;  %p801_p9 = scmp.lt.u32.totalorder %s997_s20, %s1047_s8 }
 0x2c6   : > { %p802_p10 = scmp.lt.u32.totalorder %s800_s12, %s796_s25  ;;  %p804_p12 = scmp.lt.u32.totalorder %s796_s25, %s997_s20 }
 0x2c7   : > { %p798_p7 = pnand %p797_p4, %p937_p5 }
 0x2c8   : > { %p803_p11 = por %p802_p10, %p801_p9 }
 0x2c9   : > { %p799_p8 = pneg %p798_p7 }
 0x2ca   : > { %p805_p13 = por %p804_p12, %p803_p11 }
 0x2cc   : > { %p806_p0 = pnand %p805_p13, %p799_p8 }
 0x2ce   : > { %809 = shalt.err (!%p806_p0)
}
 0x2cf   : > { %734 = dma.vmem_to_hbm [thread:$0]  (%p937_p5), %s999_s17, 128, %s997_s20, %s595_s21  }
 0x2d0 PF: > { %p740_p1 = scmp.ge.s32.totalorder %s844_s30, 2  ;;  %s620_s19 = sand.u32 1, %s832_s27  }
 0x2d1   : > { %s621_s22 = scalar_lea.sflag [#allocation3], %s620_s19 }
 0x2d2   : > { %p737_p2 = pnand %p740_p1, %p941_p6 }
 0x2d4   : > { %827 = dma.done.wait (!%p737_p2), %s621_s22, 128  }
 0x2d5   : > { %829 = vsyncadd (!%p737_p2), %s621_s22, 4294967168  ;;  %p18_p3 = scmp.ge.s32.totalorder %s924_s11, 4   ;;  %s1052_s27 = smov %s836_s28 }
 0x2d6   : > { %s1053_s28 = smov %s840_s29  ;;  %s1054_s29 = smov %s935_s14 }
 0x2d7   : > { %s1055_s30 = smov %s924_s11  ;;  %20 = sbr.rel (!%p18_p3) target bundleno = 3 (0x3), region = 90 }
 0x2de   :  { %626 = vsyncpa [#allocation3], 1 }
 0x2df   :  { %628 = vsyncpa [#allocation3 + $0x1], 1 }

// kernel: tpu_custom_call.1
= control target key start
LH: loop header
LB: loop body
LE: loop exit
PB: predicated region body
PF: predicated region fallthrough
CT: control target
= control target key end

     0   :  { %13 = vsyncpa [#allocation3], 0  ;;  %s1039_s0 = inlined_call_operand.vmem [shape: s32[1,256], index: 0, kind: input, shape index: {}]   ;;  %s1040_s1 = inlined_call_operand.vmem [shape: f32[8,256], index: 1, kind: input, shape index: {}]   ;;  %s1041_s2 = inlined_call_operand.vmem [shape: f32[8,24], index: 2, kind: input, shape index: {}]   ;;  %s1042_s3 = inlined_call_operand.vmem [shape: f32[8,1], index: 3, kind: input, shape index: {}]   ;;  %s1043_s4 = inlined_call_operand.vmem [shape: f32[8,24], index: 4, kind: input, shape index: {}]   ;;  %s1044_s5 = inlined_call_operand.vmem [shape: f32[8,1], index: 5, kind: input, shape index: {}]   ;;  %s1045_s6 = inlined_call_operand.vmem [shape: f32[8,8], index: 6, kind: input, shape index: {}]   ;;  %s1046_s7 = inlined_call_operand.vmem [shape: f32[8,1], index: 7, kind: input, shape index: {}]   ;;  %s1047_s8 = inlined_call_operand.hbm [shape: f32[8,256], index: 8, kind: output, shape index: {}]  }
   0x1   :  { %15 = vsyncpa [#allocation3 + $0x1], 0  ;;  %s899_s27 = smov 0   ;;  %s901_s28 = smov 0  }
   0x2   :  { %s903_s29 = smov 0   ;;  %s905_s30 = smov 0  }
   0x3 LB: > { %s920_s9 = sadd.s32 4294967295, %s844_s30   ;;  %s676_s10 = sadd.s32 4294967294, %s844_s30   ;;  %s844_s30 = sphi %s905_s30, %s1055_s30   ;;  %s840_s29 = sphi %s903_s29, %s1054_s29   ;;  %s836_s28 = sphi %s901_s28, %s1053_s28   ;;  %s832_s27 = sphi %s899_s27, %s1052_s27  }
   0x4   : > { %s924_s11 = sadd.s32 1, %s844_s30   ;;  %s206_s12 = sadd.s32 1, %s840_s29 }
   0x5   : > { %s203_s13 = ssub.s32 %s844_s30, %s924_s11  ;;  %p216_p0 = scmp.ne.s32.totalorder %s840_s29, %s836_s28 }
   0x6   : > { %p204_p1 = scmp.eq.s32.totalorder %s203_s13, 0  ;;  %p217_p2 = scmp.eq.s32.totalorder %s920_s9, 1 }
   0x7   : > { %p222_p3 = scmp.ne.s32.totalorder %s836_s28, %s832_s27  ;;  %p223_p4 = scmp.eq.s32.totalorder %s676_s10, 1 }
   0x8   : > { %s935_s14 = scalar_select %p204_p1, %s840_s29, %s206_s12  }
   0x9   : > { %p937_p5 = por %p217_p2, %p216_p0  ;;  %p941_p6 = por %p223_p4, %p222_p3 }
   0xa   : > { %p679_p7 = scmp.ge.s32.totalorder %s844_s30, 1  ;;  %p272_p8 = scmp.lt.s32.totalorder %s844_s30, 3 }
   0xc   : > { %p273_p9 = pnand %p679_p7, %p272_p8 }
   0xd   : > { %p308_p10 = scmp.lt.s32.totalorder (!%p273_p9), %s920_s9, 1  ;;  %v846_v0 = vmov (!%p273_p9), 0.0|0.0   ;;  %v847_v1 = vmov (!%p273_p9), 0   ;;  %v317_v2 = vld [vmem:[%s1042_s3] sm:$0xff] (!%p273_p9)  ;;  %vm848_vm0 = vmmov (!%p273_p9), 0   ;;  %v849_v3 = vmov (!%p273_p9), 0.0  }
   0xe   : > { %276 = sbr.rel (%p273_p9) target bundleno = 720 (0x2d0), region = 52  ;;  %726 = vmatprep.subr.bf16.mxu0 (!%p273_p9), %v846_v0  ;;  %780 = vset.pattern.permute.xlu1 (!%p273_p9), %v847_v1  ;;  %s850_s10 = smov (!%p273_p9), 2   ;;  %v330_v8 = vlaneseq (!%p273_p9)  ;;  %vm852_vm8 = vmmov (!%p273_p9), 1   ;;  %v316_v17 = vld [vmem:[%s1041_s2] sm:$0xff] (!%p273_p9)  ;;  %vm350_vm11 = vcmask (!%p273_p9), 195584   ;;  %vm517_vm12 = vcmask (!%p273_p9), 64512  }
   0xf   : > { %709 = vmatprep.mubr.msk.f32.mxu0 (!%p273_p9), %vm848_vm0, %v849_v3  ;;  %347 = vperm.xlu1 (!%p273_p9), %780, %v317_v2   ;;  %s851_s12 = smov (!%p273_p9), 126   ;;  %v510_v19 = vld [vmem:[%s1045_s6] sm:$0xff] (!%p273_p9) }
  0x10   : > { %730 = vmatprep.subr.bf16.mxu1 (!%p273_p9), %v846_v0  ;;  %718 = vmatprep.mubr.msk.f32.mxu1 (!%p273_p9), %vm848_vm0, %v849_v3  ;;  %v331_v9 = vshrl.u32 (!%p273_p9), %v330_v8, 7  ;;  %v319_v24 = vld [vmem:[%s1044_s5] sm:$0xff] (!%p273_p9) }
  0x11   : > { %781 = vset.pattern.permute.xlu0 (!%p273_p9), %v847_v1  ;;  %v511_v25 = vld [vmem:[%s1046_s7] sm:$0xff] (!%p273_p9) }
  0x12   : > { %v332_v10 = vsub.s32 (!%p273_p9), 0, %v331_v9  ;;  %v318_v28 = vld [vmem:[%s1043_s4] sm:$0xff] (!%p273_p9) }
  0x15   : > { %s309_s19 = scalar_select %p308_p10, %s920_s9, 1 }
  0x17   : > { %s681_s20 = sshll.u32 %s309_s19, 3  ;;  %s310_s23 = scalar_lea.vmem %s1039_s0, %s309_s19 }
  0x18   : > { %s314_s26 = scalar_lea.vmem %s1040_s1, %s681_s20  ;;  %v320_v4 = vld [vmem:[%s310_s23] sm:$0x1] }
  0x19   : > { %v315_v5 = vld [vmem:[%s314_s26] sm:$0xff]  ;;  %vm321_vm1 = vcmp.ge.s32.totalorder %v320_v4, 2  ;;  %vm322_vm2 = vcmp.lt.s32.totalorder %v320_v4, 82  ;;  %vm324_vm3 = vcmp.ge.s32.totalorder %v320_v4, 4294967294  ;;  %vm325_vm4 = vcmp.lt.s32.totalorder %v320_v4, 78  ;;  %s305_s26 = sand.u32 1, %s836_s28  }
  0x1a   : > { %327 = vrot.lane.b32.xlu0 %v315_v5, %s850_s10  ;;  %vm323_vm5 = vmand %vm321_vm1, %vm322_vm2  ;;  %s595_s21 = scalar_lea.sflag [#allocation3], %s305_s26 }
  0x1b   : > { %v329_v6 = vsel %vm323_vm5, 1, %v847_v1  ;;  %vm326_vm6 = vmand %vm324_vm3, %vm325_vm4 }
  0x1c   : > { %v338_v7 = vsel %vm326_vm6, 1, %v847_v1  ;;  %v333_v11 = vrot.slane %v329_v6, %v332_v10 }
  0x1d   : > { %v342_v14 = vrot.slane %v338_v7, %v332_v10 }
  0x1e   : > { %336 = vrot.lane.b32.xlu0 %v315_v5, %s851_s12  ;;  %vm334_vm7 = vcmp.eq.s32.totalorder %v333_v11, 1 }
  0x1f   : > { %vm962_vm9 = vmpackc.low %vm852_vm8, %vm334_vm7  ;;  %vm343_vm10 = vcmp.eq.s32.totalorder %v342_v14, 1 }
  0x8c   : > { %v328_v12 = vpop.permute.xlu0 %327 }
  0x8d   : > { %v727_v15 = vpack.c.bf16 %v315_v5, %v328_v12 }
  0x8e   : > { %v348_v18 = vpop.permute.xlu1 %347 }
  0x8f   : > { %729 = vmatpush3.bf16.msk.msra.mxu0 %vm962_vm9, %v727_v15 }
  0x90   : > { %v337_v16 = vpop.permute.xlu0 %336  ;;  %707 = vmatprep.subr.mxu0 %v849_v3 }
  0x93   : > { %708 = vmatpush3.msk.msra.mxu0 %vm343_vm10, %v337_v16 }
  0x94   : > { %710 = vmatmul.mubr.msk.f32.vlgmr.msra.gmra.mrb[0].mxu0 %vm350_vm11, %v316_v17  ;;  %721 = vmatprep.subr.mxu0 %v849_v3 }
  0x95   : > { %722 = vmatpush3.msra.mxu0 %v315_v5  ;;  %723 = vmatprep.mubr.msk.f32.mxu0 %vm848_vm0, %v849_v3 }
  0x98   : > { %724 = vmatmul.mubr.msk.f32.vlgmr.msra.gmra.mrb[2].mxu0 %vm517_vm12, %v510_v19 }
 0x167   : > { %v420_v20 = vpop.f32.mrb[0].mxu0 }
 0x168   : > { %v421_v21 = vadd.f32 %v420_v20, %v348_v18  ;;  %v711_v22 = vpop.f32.mrb[1].mxu0 }
 0x16a   : > { %v424_v23 = vmax.f32 %v421_v21, 0.0 }
 0x16b   : > { %v587_v30 = vpop.f32.mrb[2].mxu0 }
 0x16c   : > { %428 = vrot.lane.b32.xlu0 %v424_v23, %s851_s12  ;;  %425 = vrot.lane.b32.xlu1 %v424_v23, %s850_s10  ;;  %v725_v31 = vpop.f32.mrb[3].mxu0  ;;  %s680_s10 = sshll.u32 %s305_s26, 3  ;;  %s690_s12 = sshll.u32 %s920_s9, 7 }
 0x16d   : > { %s307_s13 = scalar_lea.vmem [#allocation2], %s680_s10  ;;  %s997_s20 = scalar_lea.hbm %s1047_s8, %s690_s12 }
 0x16e   : > { %s608_s17 = sshll.u32 %s307_s13, 4  ;;  %s853_s9 = smov [#allocation2]   ;;  %s999_s17 = int_to_ptr.vmem [resolvable:$true] %s608_s17 }
 0x16f   : > { %s782_s22 = scalar_lea.vmem %s999_s17, 128  ;;  %s786_s23 = sshll.u32 %s853_s9, 4  ;;  %s787_s23 = int_to_ptr.vmem [resolvable:$false] %s786_s23 }
 0x170   : > { %433 = vperm.xlu1 %780, %v319_v24   ;;  %514 = vperm.xlu0 %781, %v511_v25   ;;  %p783_p11 = scmp.ne.s32.totalorder %s999_s17, %s782_s22  ;;  %s788_s24 = scalar_lea.vmem %s787_s23, 256 }
 0x171   : > { %p789_p0 = scmp.lt.s32.totalorder %s999_s17, %s787_s23  ;;  %p790_p1 = scmp.lt.s32.totalorder %s788_s24, %s782_s22 }
 0x172   : > { %p784_p12 = pnand %p783_p11, %p937_p5 }
 0x173   : > { %p791_p2 = por %p790_p1, %p789_p0 }
 0x174   : > { %p785_p13 = pneg %p784_p12 }
 0x176   : > { %p792_p3 = pnand %p791_p2, %p785_p13 }
 0x1de   : > { %v426_v26 = vpop.permute.xlu1 %425  ;;  %v429_v29 = vpop.permute.xlu0 %428 }
 0x1df   : > { %v731_v27 = vpack.c.bf16 %v424_v23, %v426_v26 }
 0x1e1   : > { %733 = vmatpush3.bf16.msk.msra.mxu1 %vm962_vm9, %v731_v27 }
 0x1e2   : > { %716 = vmatprep.subr.mxu1 %v849_v3 }
 0x1e5   : > { %717 = vmatpush3.msk.msra.mxu1 %vm343_vm10, %v429_v29 }
 0x1e6   : > { %719 = vmatmul.mubr.msk.f32.vlgmr.msra.gmra.mrb[0].mxu1 %vm350_vm11, %v318_v28 }
 0x1ef   : > { %v515_v32 = vpop.permute.xlu0 %514  ;;  %v434_v33 = vpop.permute.xlu1 %433 }
 0x1f0   : > { %v588_v37 = vadd.f32 %v587_v30, %v515_v32 }
 0x2b9   : > { %v505_v34 = vpop.f32.mrb[0].mxu1 }
 0x2ba   : > { %v506_v35 = vadd.f32 %v505_v34, %v434_v33  ;;  %v720_v36 = vpop.f32.mrb[1].mxu1 }
 0x2bc   : > { %v509_v38 = vmax.f32 %v506_v35, 0.0 }
 0x2be   : > { %v591_v39 = vadd.f32 %v588_v37, %v509_v38 }
 0x2c0   : > { %v592_v40 = vmax.f32 %v591_v39, 0.0 }
 0x2c2   : > { %593 = vst [vmem:[%s307_s13] sm:$0xff] %v592_v40 }
 0x2c3   : > { %795 = shalt.err (!%p792_p3)
}
 0x2c4   : > { %s796_s25 = scalar_lea.hbm %s997_s20, 128  ;;  %s800_s12 = scalar_lea.hbm %s1047_s8, 256 }
 0x2c5   : > { %p797_p4 = scmp.ne.s32.totalorder %s997_s20, %s796_s25  ;;  %p801_p9 = scmp.lt.u32.totalorder %s997_s20, %s1047_s8 }
 0x2c6   : > { %p802_p10 = scmp.lt.u32.totalorder %s800_s12, %s796_s25  ;;  %p804_p12 = scmp.lt.u32.totalorder %s796_s25, %s997_s20 }
 0x2c7   : > { %p798_p7 = pnand %p797_p4, %p937_p5 }
 0x2c8   : > { %p803_p11 = por %p802_p10, %p801_p9 }
 0x2c9   : > { %p799_p8 = pneg %p798_p7 }
 0x2ca   : > { %p805_p13 = por %p804_p12, %p803_p11 }
 0x2cc   : > { %p806_p0 = pnand %p805_p13, %p799_p8 }
 0x2ce   : > { %809 = shalt.err (!%p806_p0)
}
 0x2cf   : > { %734 = dma.vmem_to_hbm [thread:$0]  (%p937_p5), %s999_s17, 128, %s997_s20, %s595_s21  }
 0x2d0 PF: > { %p740_p1 = scmp.ge.s32.totalorder %s844_s30, 2  ;;  %s620_s19 = sand.u32 1, %s832_s27  }
 0x2d1   : > { %s621_s22 = scalar_lea.sflag [#allocation3], %s620_s19 }
 0x2d2   : > { %p737_p2 = pnand %p740_p1, %p941_p6 }
 0x2d4   : > { %827 = dma.done.wait (!%p737_p2), %s621_s22, 128  }
 0x2d5   : > { %829 = vsyncadd (!%p737_p2), %s621_s22, 4294967168  ;;  %p18_p3 = scmp.ge.s32.totalorder %s924_s11, 4   ;;  %s1052_s27 = smov %s836_s28 }
 0x2d6   : > { %s1053_s28 = smov %s840_s29  ;;  %s1054_s29 = smov %s935_s14 }
 0x2d7   : > { %s1055_s30 = smov %s924_s11  ;;  %20 = sbr.rel (!%p18_p3) target bundleno = 3 (0x3), region = 90 }
 0x2de   :  { %626 = vsyncpa [#allocation3], 1 }
 0x2df   :  { %628 = vsyncpa [#allocation3 + $0x1], 1 }

</bundles_post_ra>
